<compile_context>
chip_gen: v7x
topology: tpu7x:2x2x1
jax: 0.10.0
libtpu: 0.0.40
codegen_flags: <defaults>
</compile_context>

<pallas_src>
import jax
import jax.numpy as jnp
import numpy as np
from jax.experimental import pallas as pl
from jax.experimental.pallas import tpu as pltpu

EPS = 1e-5
K = 3
STRIDE = 2
PAD = 1
OUT_PAD = 1
C_IN = 1
C_OUT = 2
H_IN = 11
W_IN = 11
W_PAD = 16                   # padded row stride (cols 11..15 are zeros)
L_ROWS = H_IN * W_PAD        # 176 lanes carrying the (zero-padded) rows
LP = 256                     # lane-padded width: multiple of 128 -> unmasked stores
L_VALID = H_IN * W_IN        # 121 true spatial positions per phase
N_PHASE = 4                  # (even/odd row) x (even/odd col)
THRESH_FOLD = 1.651 - 0.622  # folded into the BN shift


def fused_kernel(w_ref, b_ref, g_ref, be_ref, x_ref, out_ref):
    # w_ref   : SMEM (C_OUT*K*K,) raw ConvTranspose2d weights, flat index [co, ky, kx]
    # b_ref   : SMEM (C_OUT,)  conv-transpose bias
    # g_ref   : SMEM (C_OUT,)  BN gamma
    # be_ref  : SMEM (C_OUT,)  BN beta
    # x_ref   : VMEM (N, LP) f32 input; lane l = a*W_PAD + b, zeros outside 11x11 image
    # out_ref : VMEM (C_OUT, N_PHASE, N, LP) int8 result, phase order [ee, eo, oe, oo]
    N = x_ref.shape[0]
    xc = x_ref[...]                                    # x[a, b]

    # Neighbour shifts as pure XLU lane rotations: the zero pad columns / tail
    # lanes of xc supply the out-of-image zeros, so no edge masks are needed.
    x_rt = pltpu.roll(xc, LP - 1, axis=1)              # x[a,   b+1]
    x_dn = pltpu.roll(xc, LP - W_PAD, axis=1)          # x[a+1, b  ]
    x_dr = pltpu.roll(xc, LP - W_PAD - 1, axis=1)      # x[a+1, b+1]

    # Validity mask (true 11x11 positions) for the BN batch statistics only.
    lane = jax.lax.broadcasted_iota(jnp.int32, (1, LP), 1)
    valid = jnp.logical_and((lane & (W_PAD - 1)) < W_IN,
                            lane < L_ROWS).astype(jnp.float32)

    inv_cnt = 1.0 / float(N_PHASE * N * L_VALID)
    for co in range(C_OUT):
        w = [w_ref[co * K * K + t] for t in range(K * K)]    # w[ky*3 + kx]
        b = b_ref[co]
        # stride-2 conv-transpose, sub-pixel phase decomposition (raw weights):
        p_ee = xc * w[4] + b                                          # out[2a,   2b  ]
        p_eo = xc * w[5] + x_rt * w[3] + b                            # out[2a,   2b+1]
        p_oe = xc * w[7] + x_dn * w[1] + b                            # out[2a+1, 2b  ]
        p_oo = xc * w[8] + x_rt * w[6] + x_dn * w[2] + x_dr * w[0] + b  # out[2a+1, 2b+1]
        phases = (p_ee, p_eo, p_oe, p_oo)

        # single-pass BN batch stats: vector accumulate, ONE reduce each.
        s_vec = (p_ee + p_eo) + (p_oe + p_oo)
        ss_vec = (p_ee * p_ee + p_eo * p_eo) + (p_oe * p_oe + p_oo * p_oo)
        s = jnp.sum(s_vec * valid)
        ss = jnp.sum(ss_vec * valid)
        mean = s * inv_cnt
        var = ss * inv_cnt - mean * mean
        scale = g_ref[co] * jax.lax.rsqrt(var + EPS)
        shift = be_ref[co] - mean * scale + THRESH_FOLD   # threshold folded in

        for ph in range(N_PHASE):
            p = phases[ph]
            # (BN(x4) + ReLU(x4) + 1.651) > 0.622  ==  p*scale + shift + max(p,0) > 0
            out_ref[co, ph] = ((p * scale + shift + jnp.maximum(p, 0.0)) > 0.0
                               ).astype(jnp.int8)


@jax.jit
def model_forward(x, w_t, bias, gamma, beta):
    # x   : (N, 1, H_IN, W_IN) float32
    # w_t : (C_IN, C_OUT, K, K) float32  (torch ConvTranspose2d weight layout)
    N = x.shape[0]
    Ho = (H_IN - 1) * STRIDE - 2 * PAD + K + OUT_PAD
    Wo = (W_IN - 1) * STRIDE - 2 * PAD + K + OUT_PAD
    assert (Ho, Wo) == (2 * H_IN, 2 * W_IN)   # phase-decomposition assumption

    # Layout prep (tiny, fused by XLA): rows strided by 16 with zero pad
    # columns, then lane-pad to 256 so the kernel is fully lane-dense.
    x_rows = jnp.pad(x.reshape(N, H_IN, W_IN), ((0, 0), (0, 0), (0, W_PAD - W_IN)))
    x_flat = jnp.pad(x_rows.reshape(N, L_ROWS), ((0, 0), (0, LP - L_ROWS)))
    w_flat = w_t.reshape(-1)                  # raw weights (no flip needed)

    out_i8 = pl.pallas_call(
        fused_kernel,
        out_shape=jax.ShapeDtypeStruct((C_OUT, N_PHASE, N, LP), jnp.int8),
        in_specs=[
            pl.BlockSpec(memory_space=pltpu.MemorySpace.SMEM),   # w_flat
            pl.BlockSpec(memory_space=pltpu.MemorySpace.SMEM),   # bias
            pl.BlockSpec(memory_space=pltpu.MemorySpace.SMEM),   # gamma
            pl.BlockSpec(memory_space=pltpu.MemorySpace.SMEM),   # beta
            pl.BlockSpec(memory_space=pltpu.MemorySpace.VMEM),   # x_flat
        ],
        out_specs=pl.BlockSpec(memory_space=pltpu.MemorySpace.VMEM),
    )(w_flat, bias, gamma, beta, x_flat)

    # reassemble phases -> NCHW (tiny fused XLA tail, per review option (a)):
    # out[n, co, 2a+py, 2b+px] = slab[co, 2*py+px, n, a*W_PAD + b]
    ph = out_i8[..., :L_ROWS].reshape(C_OUT, 2, 2, N, H_IN, W_PAD)[..., :W_IN]
    y = jnp.transpose(ph, (3, 0, 4, 1, 5, 2)).reshape(N, C_OUT, Ho, Wo)
    return y.astype(jnp.bool_)


def reference_decision(x, w_t, bias, gamma, beta):
    # pure-JAX reference: returns the decision variable (x5 + x6 + 1.651 - 0.622)
    w_corr = jnp.transpose(w_t, (1, 0, 2, 3))[:, :, ::-1, ::-1]  # (C_OUT, C_IN, K, K)
    x4 = jax.lax.conv_general_dilated(
        x, w_corr, window_strides=(1, 1),
        padding=((K - 1 - PAD, K - 1 - PAD + OUT_PAD),) * 2,
        lhs_dilation=(STRIDE, STRIDE),
        dimension_numbers=("NCHW", "OIHW", "NCHW"),
    ) + bias[None, :, None, None]
    mean = x4.mean(axis=(0, 2, 3), keepdims=True)
    var = ((x4 - mean) ** 2).mean(axis=(0, 2, 3), keepdims=True)
    x5 = gamma[None, :, None, None] * (x4 - mean) / jnp.sqrt(var + EPS) + beta[None, :, None, None]
    x6 = jnp.maximum(x4, 0.0)
    return x5 + x6 + 1.651 - 0.622


if __name__ == "__main__":
    key = jax.random.PRNGKey(0)
    k1, k2, k3 = jax.random.split(key, 3)

    N = 2                                    # matches x3 = torch.randn(2, 1, 11, 11)
    x = jax.random.normal(k1, (N, C_IN, H_IN, W_IN), jnp.float32)

    bound = 1.0 / np.sqrt(C_IN * K * K)
    w_t = jax.random.uniform(k2, (C_IN, C_OUT, K, K), jnp.float32, -bound, bound)
    bias = jax.random.uniform(k3, (C_OUT,), jnp.float32, -bound, bound)

    # TODO(synk): the PyTorch module declares BatchNorm2d(1) but feeds it the
    # 2-channel conv_transpose output (errors in eager PyTorch); here we apply
    # fresh-init training-mode BN (gamma=1, beta=0) over the 2 channels.
    gamma = jnp.ones((C_OUT,), jnp.float32)
    beta = jnp.zeros((C_OUT,), jnp.float32)

    out = model_forward(x, w_t, bias, gamma, beta)
    jax.block_until_ready(out)

    dec = np.asarray(reference_decision(x, w_t, bias, gamma, beta))
    ref = dec > 0.0
    out_np = np.asarray(out)

    assert out.shape == (N, C_OUT, 2 * H_IN, 2 * W_IN) and out.dtype == jnp.bool_
    # exact comparison everywhere except values sitting numerically on the threshold
    safe = np.abs(dec) > 1e-4
    assert np.array_equal(out_np[safe], ref[safe])
    print("KERNEL_OK")
</pallas_src>

<mosaic_0001>
module attributes {stable_mosaic.version = 11 : i64} {
  func.func @fused_kernel(%arg0: memref<18xf32, #tpu.memory_space<smem>>, %arg1: memref<2xf32, #tpu.memory_space<smem>>, %arg2: memref<2xf32, #tpu.memory_space<smem>>, %arg3: memref<2xf32, #tpu.memory_space<smem>>, %arg4: memref<2x256xf32, #tpu.memory_space<vmem>>, %arg5: memref<2x4x2x256xi8, #tpu.memory_space<vmem>>) attributes {dimension_semantics = [], scalar_prefetch = 0 : i64, scratch_operands = 0 : i64, tpu.core_type = #tpu.core_type<tc>} {
    %c0 = arith.constant 0 : index
    %c0_0 = arith.constant 0 : index
    %0 = vector.load %arg4[%c0, %c0_0] : memref<2x256xf32, #tpu.memory_space<vmem>>, vector<2x256xf32>
    %c255_i32 = arith.constant 255 : i32
    %1 = tpu.dynamic_rotate %0 by %c255_i32 dim 1 : vector<2x256xf32>, i32 -> vector<2x256xf32>
    %c240_i32 = arith.constant 240 : i32
    %2 = tpu.dynamic_rotate %0 by %c240_i32 dim 1 : vector<2x256xf32>, i32 -> vector<2x256xf32>
    %c239_i32 = arith.constant 239 : i32
    %3 = tpu.dynamic_rotate %0 by %c239_i32 dim 1 : vector<2x256xf32>, i32 -> vector<2x256xf32>
    %4 = tpu.iota {dimensions = array<i32: 1>} : vector<1x256xi32>
    %c15_i32 = arith.constant 15 : i32
    %5 = vector.broadcast %c15_i32 : i32 to vector<1x256xi32>
    %6 = arith.andi %4, %5 : vector<1x256xi32>
    %c11_i32 = arith.constant 11 : i32
    %7 = vector.broadcast %c11_i32 : i32 to vector<1x256xi32>
    %8 = arith.cmpi slt, %6, %7 : vector<1x256xi32>
    %c176_i32 = arith.constant 176 : i32
    %9 = vector.broadcast %c176_i32 : i32 to vector<1x256xi32>
    %10 = arith.cmpi slt, %4, %9 : vector<1x256xi32>
    %11 = arith.andi %8, %10 : vector<1x256xi1>
    %12 = arith.extui %11 : vector<1x256xi1> to vector<1x256xi32>
    %13 = arith.sitofp %12 : vector<1x256xi32> to vector<1x256xf32>
    %c0_1 = arith.constant 0 : index
    %14 = memref.load %arg0[%c0_1] : memref<18xf32, #tpu.memory_space<smem>>
    %c1 = arith.constant 1 : index
    %15 = memref.load %arg0[%c1] : memref<18xf32, #tpu.memory_space<smem>>
    %c2 = arith.constant 2 : index
    %16 = memref.load %arg0[%c2] : memref<18xf32, #tpu.memory_space<smem>>
    %c3 = arith.constant 3 : index
    %17 = memref.load %arg0[%c3] : memref<18xf32, #tpu.memory_space<smem>>
    %c4 = arith.constant 4 : index
    %18 = memref.load %arg0[%c4] : memref<18xf32, #tpu.memory_space<smem>>
    %c5 = arith.constant 5 : index
    %19 = memref.load %arg0[%c5] : memref<18xf32, #tpu.memory_space<smem>>
    %c6 = arith.constant 6 : index
    %20 = memref.load %arg0[%c6] : memref<18xf32, #tpu.memory_space<smem>>
    %c7 = arith.constant 7 : index
    %21 = memref.load %arg0[%c7] : memref<18xf32, #tpu.memory_space<smem>>
    %c8 = arith.constant 8 : index
    %22 = memref.load %arg0[%c8] : memref<18xf32, #tpu.memory_space<smem>>
    %c0_2 = arith.constant 0 : index
    %23 = memref.load %arg1[%c0_2] : memref<2xf32, #tpu.memory_space<smem>>
    %24 = vector.broadcast %18 : f32 to vector<2x256xf32>
    %25 = arith.mulf %0, %24 : vector<2x256xf32>
    %26 = vector.broadcast %23 : f32 to vector<2x256xf32>
    %27 = arith.addf %25, %26 : vector<2x256xf32>
    %28 = vector.broadcast %19 : f32 to vector<2x256xf32>
    %29 = arith.mulf %0, %28 : vector<2x256xf32>
    %30 = vector.broadcast %17 : f32 to vector<2x256xf32>
    %31 = arith.mulf %1, %30 : vector<2x256xf32>
    %32 = arith.addf %29, %31 : vector<2x256xf32>
    %33 = vector.broadcast %23 : f32 to vector<2x256xf32>
    %34 = arith.addf %32, %33 : vector<2x256xf32>
    %35 = vector.broadcast %21 : f32 to vector<2x256xf32>
    %36 = arith.mulf %0, %35 : vector<2x256xf32>
    %37 = vector.broadcast %15 : f32 to vector<2x256xf32>
    %38 = arith.mulf %2, %37 : vector<2x256xf32>
    %39 = arith.addf %36, %38 : vector<2x256xf32>
    %40 = vector.broadcast %23 : f32 to vector<2x256xf32>
    %41 = arith.addf %39, %40 : vector<2x256xf32>
    %42 = vector.broadcast %22 : f32 to vector<2x256xf32>
    %43 = arith.mulf %0, %42 : vector<2x256xf32>
    %44 = vector.broadcast %20 : f32 to vector<2x256xf32>
    %45 = arith.mulf %1, %44 : vector<2x256xf32>
    %46 = arith.addf %43, %45 : vector<2x256xf32>
    %47 = vector.broadcast %16 : f32 to vector<2x256xf32>
    %48 = arith.mulf %2, %47 : vector<2x256xf32>
    %49 = arith.addf %46, %48 : vector<2x256xf32>
    %50 = vector.broadcast %14 : f32 to vector<2x256xf32>
    %51 = arith.mulf %3, %50 : vector<2x256xf32>
    %52 = arith.addf %49, %51 : vector<2x256xf32>
    %53 = vector.broadcast %23 : f32 to vector<2x256xf32>
    %54 = arith.addf %52, %53 : vector<2x256xf32>
    %55 = arith.addf %27, %34 : vector<2x256xf32>
    %56 = arith.addf %41, %54 : vector<2x256xf32>
    %57 = arith.addf %55, %56 : vector<2x256xf32>
    %58 = arith.mulf %27, %27 : vector<2x256xf32>
    %59 = arith.mulf %34, %34 : vector<2x256xf32>
    %60 = arith.addf %58, %59 : vector<2x256xf32>
    %61 = arith.mulf %41, %41 : vector<2x256xf32>
    %62 = arith.mulf %54, %54 : vector<2x256xf32>
    %63 = arith.addf %61, %62 : vector<2x256xf32>
    %64 = arith.addf %60, %63 : vector<2x256xf32>
    %65 = vector.broadcast %13 : vector<1x256xf32> to vector<2x256xf32>
    %66 = arith.mulf %57, %65 : vector<2x256xf32>
    %67 = vector.shape_cast %66 : vector<2x256xf32> to vector<1x2x256xf32>
    %cst = arith.constant dense<0.000000e+00> : vector<1xf32>
    %68 = vector.multi_reduction <add>, %67, %cst [1, 2] : vector<1x2x256xf32> to vector<1xf32>
    %69 = vector.shape_cast %68 : vector<1xf32> to vector<1x1x1xf32>
    %70 = vector.extract %69[0, 0, 0] : f32 from vector<1x1x1xf32>
    %71 = vector.broadcast %13 : vector<1x256xf32> to vector<2x256xf32>
    %72 = arith.mulf %64, %71 : vector<2x256xf32>
    %73 = vector.shape_cast %72 : vector<2x256xf32> to vector<1x2x256xf32>
    %cst_3 = arith.constant dense<0.000000e+00> : vector<1xf32>
    %74 = vector.multi_reduction <add>, %73, %cst_3 [1, 2] : vector<1x2x256xf32> to vector<1xf32>
    %75 = vector.shape_cast %74 : vector<1xf32> to vector<1x1x1xf32>
    %76 = vector.extract %75[0, 0, 0] : f32 from vector<1x1x1xf32>
    %cst_4 = arith.constant 0.00103305781 : f32
    %77 = arith.mulf %70, %cst_4 : f32
    %cst_5 = arith.constant 0.00103305781 : f32
    %78 = arith.mulf %76, %cst_5 : f32
    %79 = arith.mulf %77, %77 : f32
    %80 = arith.subf %78, %79 : f32
    %c0_6 = arith.constant 0 : index
    %81 = memref.load %arg2[%c0_6] : memref<2xf32, #tpu.memory_space<smem>>
    %cst_7 = arith.constant 9.99999974E-6 : f32
    %82 = arith.addf %80, %cst_7 : f32
    %83 = math.rsqrt %82 : f32
    %84 = arith.mulf %81, %83 : f32
    %c0_8 = arith.constant 0 : index
    %85 = memref.load %arg3[%c0_8] : memref<2xf32, #tpu.memory_space<smem>>
    %86 = arith.mulf %77, %84 : f32
    %87 = arith.subf %85, %86 : f32
    %cst_9 = arith.constant 1.029000e+00 : f32
    %88 = arith.addf %87, %cst_9 : f32
    %89 = vector.broadcast %84 : f32 to vector<2x256xf32>
    %90 = arith.mulf %27, %89 : vector<2x256xf32>
    %91 = vector.broadcast %88 : f32 to vector<2x256xf32>
    %92 = arith.addf %90, %91 : vector<2x256xf32>
    %cst_10 = arith.constant 0.000000e+00 : f32
    %93 = vector.broadcast %cst_10 : f32 to vector<2x256xf32>
    %94 = arith.maximumf %27, %93 : vector<2x256xf32>
    %95 = arith.addf %92, %94 : vector<2x256xf32>
    %cst_11 = arith.constant 0.000000e+00 : f32
    %96 = vector.broadcast %cst_11 : f32 to vector<2x256xf32>
    %97 = arith.cmpf ogt, %95, %96 : vector<2x256xf32>
    %98 = arith.extui %97 : vector<2x256xi1> to vector<2x256xi8>
    %c0_12 = arith.constant 0 : index
    %c0_13 = arith.constant 0 : index
    %c0_14 = arith.constant 0 : index
    %c0_15 = arith.constant 0 : index
    %99 = vector.load %arg5[%c0_12, %c0_13, %c0_14, %c0_15] : memref<2x4x2x256xi8, #tpu.memory_space<vmem>>, vector<1x1x2x256xi8>
    %100 = vector.shape_cast %99 : vector<1x1x2x256xi8> to vector<2x256xi8>
    %101 = vector.shape_cast %98 : vector<2x256xi8> to vector<1x1x2x256xi8>
    tpu.vector_store %arg5[%c0_12, %c0_13, %c0_14, %c0_15], %101 {strides = array<i32>} : memref<2x4x2x256xi8, #tpu.memory_space<vmem>>, vector<1x1x2x256xi8>,
    %102 = vector.broadcast %84 : f32 to vector<2x256xf32>
    %103 = arith.mulf %34, %102 : vector<2x256xf32>
    %104 = vector.broadcast %88 : f32 to vector<2x256xf32>
    %105 = arith.addf %103, %104 : vector<2x256xf32>
    %cst_16 = arith.constant 0.000000e+00 : f32
    %106 = vector.broadcast %cst_16 : f32 to vector<2x256xf32>
    %107 = arith.maximumf %34, %106 : vector<2x256xf32>
    %108 = arith.addf %105, %107 : vector<2x256xf32>
    %cst_17 = arith.constant 0.000000e+00 : f32
    %109 = vector.broadcast %cst_17 : f32 to vector<2x256xf32>
    %110 = arith.cmpf ogt, %108, %109 : vector<2x256xf32>
    %111 = arith.extui %110 : vector<2x256xi1> to vector<2x256xi8>
    %c0_18 = arith.constant 0 : index
    %c1_19 = arith.constant 1 : index
    %c0_20 = arith.constant 0 : index
    %c0_21 = arith.constant 0 : index
    %112 = vector.load %arg5[%c0_18, %c1_19, %c0_20, %c0_21] : memref<2x4x2x256xi8, #tpu.memory_space<vmem>>, vector<1x1x2x256xi8>
    %113 = vector.shape_cast %112 : vector<1x1x2x256xi8> to vector<2x256xi8>
    %114 = vector.shape_cast %111 : vector<2x256xi8> to vector<1x1x2x256xi8>
    tpu.vector_store %arg5[%c0_18, %c1_19, %c0_20, %c0_21], %114 {strides = array<i32>} : memref<2x4x2x256xi8, #tpu.memory_space<vmem>>, vector<1x1x2x256xi8>,
    %115 = vector.broadcast %84 : f32 to vector<2x256xf32>
    %116 = arith.mulf %41, %115 : vector<2x256xf32>
    %117 = vector.broadcast %88 : f32 to vector<2x256xf32>
    %118 = arith.addf %116, %117 : vector<2x256xf32>
    %cst_22 = arith.constant 0.000000e+00 : f32
    %119 = vector.broadcast %cst_22 : f32 to vector<2x256xf32>
    %120 = arith.maximumf %41, %119 : vector<2x256xf32>
    %121 = arith.addf %118, %120 : vector<2x256xf32>
    %cst_23 = arith.constant 0.000000e+00 : f32
    %122 = vector.broadcast %cst_23 : f32 to vector<2x256xf32>
    %123 = arith.cmpf ogt, %121, %122 : vector<2x256xf32>
    %124 = arith.extui %123 : vector<2x256xi1> to vector<2x256xi8>
    %c0_24 = arith.constant 0 : index
    %c2_25 = arith.constant 2 : index
    %c0_26 = arith.constant 0 : index
    %c0_27 = arith.constant 0 : index
    %125 = vector.load %arg5[%c0_24, %c2_25, %c0_26, %c0_27] : memref<2x4x2x256xi8, #tpu.memory_space<vmem>>, vector<1x1x2x256xi8>
    %126 = vector.shape_cast %125 : vector<1x1x2x256xi8> to vector<2x256xi8>
    %127 = vector.shape_cast %124 : vector<2x256xi8> to vector<1x1x2x256xi8>
    tpu.vector_store %arg5[%c0_24, %c2_25, %c0_26, %c0_27], %127 {strides = array<i32>} : memref<2x4x2x256xi8, #tpu.memory_space<vmem>>, vector<1x1x2x256xi8>,
    %128 = vector.broadcast %84 : f32 to vector<2x256xf32>
    %129 = arith.mulf %54, %128 : vector<2x256xf32>
    %130 = vector.broadcast %88 : f32 to vector<2x256xf32>
    %131 = arith.addf %129, %130 : vector<2x256xf32>
    %cst_28 = arith.constant 0.000000e+00 : f32
    %132 = vector.broadcast %cst_28 : f32 to vector<2x256xf32>
    %133 = arith.maximumf %54, %132 : vector<2x256xf32>
    %134 = arith.addf %131, %133 : vector<2x256xf32>
    %cst_29 = arith.constant 0.000000e+00 : f32
    %135 = vector.broadcast %cst_29 : f32 to vector<2x256xf32>
    %136 = arith.cmpf ogt, %134, %135 : vector<2x256xf32>
    %137 = arith.extui %136 : vector<2x256xi1> to vector<2x256xi8>
    %c0_30 = arith.constant 0 : index
    %c3_31 = arith.constant 3 : index
    %c0_32 = arith.constant 0 : index
    %c0_33 = arith.constant 0 : index
    %138 = vector.load %arg5[%c0_30, %c3_31, %c0_32, %c0_33] : memref<2x4x2x256xi8, #tpu.memory_space<vmem>>, vector<1x1x2x256xi8>
    %139 = vector.shape_cast %138 : vector<1x1x2x256xi8> to vector<2x256xi8>
    %140 = vector.shape_cast %137 : vector<2x256xi8> to vector<1x1x2x256xi8>
    tpu.vector_store %arg5[%c0_30, %c3_31, %c0_32, %c0_33], %140 {strides = array<i32>} : memref<2x4x2x256xi8, #tpu.memory_space<vmem>>, vector<1x1x2x256xi8>,
    %c9 = arith.constant 9 : index
    %141 = memref.load %arg0[%c9] : memref<18xf32, #tpu.memory_space<smem>>
    %c10 = arith.constant 10 : index
    %142 = memref.load %arg0[%c10] : memref<18xf32, #tpu.memory_space<smem>>
    %c11 = arith.constant 11 : index
    %143 = memref.load %arg0[%c11] : memref<18xf32, #tpu.memory_space<smem>>
    %c12 = arith.constant 12 : index
    %144 = memref.load %arg0[%c12] : memref<18xf32, #tpu.memory_space<smem>>
    %c13 = arith.constant 13 : index
    %145 = memref.load %arg0[%c13] : memref<18xf32, #tpu.memory_space<smem>>
    %c14 = arith.constant 14 : index
    %146 = memref.load %arg0[%c14] : memref<18xf32, #tpu.memory_space<smem>>
    %c15 = arith.constant 15 : index
    %147 = memref.load %arg0[%c15] : memref<18xf32, #tpu.memory_space<smem>>
    %c16 = arith.constant 16 : index
    %148 = memref.load %arg0[%c16] : memref<18xf32, #tpu.memory_space<smem>>
    %c17 = arith.constant 17 : index
    %149 = memref.load %arg0[%c17] : memref<18xf32, #tpu.memory_space<smem>>
    %c1_34 = arith.constant 1 : index
    %150 = memref.load %arg1[%c1_34] : memref<2xf32, #tpu.memory_space<smem>>
    %151 = vector.broadcast %145 : f32 to vector<2x256xf32>
    %152 = arith.mulf %0, %151 : vector<2x256xf32>
    %153 = vector.broadcast %150 : f32 to vector<2x256xf32>
    %154 = arith.addf %152, %153 : vector<2x256xf32>
    %155 = vector.broadcast %146 : f32 to vector<2x256xf32>
    %156 = arith.mulf %0, %155 : vector<2x256xf32>
    %157 = vector.broadcast %144 : f32 to vector<2x256xf32>
    %158 = arith.mulf %1, %157 : vector<2x256xf32>
    %159 = arith.addf %156, %158 : vector<2x256xf32>
    %160 = vector.broadcast %150 : f32 to vector<2x256xf32>
    %161 = arith.addf %159, %160 : vector<2x256xf32>
    %162 = vector.broadcast %148 : f32 to vector<2x256xf32>
    %163 = arith.mulf %0, %162 : vector<2x256xf32>
    %164 = vector.broadcast %142 : f32 to vector<2x256xf32>
    %165 = arith.mulf %2, %164 : vector<2x256xf32>
    %166 = arith.addf %163, %165 : vector<2x256xf32>
    %167 = vector.broadcast %150 : f32 to vector<2x256xf32>
    %168 = arith.addf %166, %167 : vector<2x256xf32>
    %169 = vector.broadcast %149 : f32 to vector<2x256xf32>
    %170 = arith.mulf %0, %169 : vector<2x256xf32>
    %171 = vector.broadcast %147 : f32 to vector<2x256xf32>
    %172 = arith.mulf %1, %171 : vector<2x256xf32>
    %173 = arith.addf %170, %172 : vector<2x256xf32>
    %174 = vector.broadcast %143 : f32 to vector<2x256xf32>
    %175 = arith.mulf %2, %174 : vector<2x256xf32>
    %176 = arith.addf %173, %175 : vector<2x256xf32>
    %177 = vector.broadcast %141 : f32 to vector<2x256xf32>
    %178 = arith.mulf %3, %177 : vector<2x256xf32>
    %179 = arith.addf %176, %178 : vector<2x256xf32>
    %180 = vector.broadcast %150 : f32 to vector<2x256xf32>
    %181 = arith.addf %179, %180 : vector<2x256xf32>
    %182 = arith.addf %154, %161 : vector<2x256xf32>
    %183 = arith.addf %168, %181 : vector<2x256xf32>
    %184 = arith.addf %182, %183 : vector<2x256xf32>
    %185 = arith.mulf %154, %154 : vector<2x256xf32>
    %186 = arith.mulf %161, %161 : vector<2x256xf32>
    %187 = arith.addf %185, %186 : vector<2x256xf32>
    %188 = arith.mulf %168, %168 : vector<2x256xf32>
    %189 = arith.mulf %181, %181 : vector<2x256xf32>
    %190 = arith.addf %188, %189 : vector<2x256xf32>
    %191 = arith.addf %187, %190 : vector<2x256xf32>
    %192 = vector.broadcast %13 : vector<1x256xf32> to vector<2x256xf32>
    %193 = arith.mulf %184, %192 : vector<2x256xf32>
    %194 = vector.shape_cast %193 : vector<2x256xf32> to vector<1x2x256xf32>
    %cst_35 = arith.constant dense<0.000000e+00> : vector<1xf32>
    %195 = vector.multi_reduction <add>, %194, %cst_35 [1, 2] : vector<1x2x256xf32> to vector<1xf32>
    %196 = vector.shape_cast %195 : vector<1xf32> to vector<1x1x1xf32>
    %197 = vector.extract %196[0, 0, 0] : f32 from vector<1x1x1xf32>
    %198 = vector.broadcast %13 : vector<1x256xf32> to vector<2x256xf32>
    %199 = arith.mulf %191, %198 : vector<2x256xf32>
    %200 = vector.shape_cast %199 : vector<2x256xf32> to vector<1x2x256xf32>
    %cst_36 = arith.constant dense<0.000000e+00> : vector<1xf32>
    %201 = vector.multi_reduction <add>, %200, %cst_36 [1, 2] : vector<1x2x256xf32> to vector<1xf32>
    %202 = vector.shape_cast %201 : vector<1xf32> to vector<1x1x1xf32>
    %203 = vector.extract %202[0, 0, 0] : f32 from vector<1x1x1xf32>
    %cst_37 = arith.constant 0.00103305781 : f32
    %204 = arith.mulf %197, %cst_37 : f32
    %cst_38 = arith.constant 0.00103305781 : f32
    %205 = arith.mulf %203, %cst_38 : f32
    %206 = arith.mulf %204, %204 : f32
    %207 = arith.subf %205, %206 : f32
    %c1_39 = arith.constant 1 : index
    %208 = memref.load %arg2[%c1_39] : memref<2xf32, #tpu.memory_space<smem>>
    %cst_40 = arith.constant 9.99999974E-6 : f32
    %209 = arith.addf %207, %cst_40 : f32
    %210 = math.rsqrt %209 : f32
    %211 = arith.mulf %208, %210 : f32
    %c1_41 = arith.constant 1 : index
    %212 = memref.load %arg3[%c1_41] : memref<2xf32, #tpu.memory_space<smem>>
    %213 = arith.mulf %204, %211 : f32
    %214 = arith.subf %212, %213 : f32
    %cst_42 = arith.constant 1.029000e+00 : f32
    %215 = arith.addf %214, %cst_42 : f32
    %216 = vector.broadcast %211 : f32 to vector<2x256xf32>
    %217 = arith.mulf %154, %216 : vector<2x256xf32>
    %218 = vector.broadcast %215 : f32 to vector<2x256xf32>
    %219 = arith.addf %217, %218 : vector<2x256xf32>
    %cst_43 = arith.constant 0.000000e+00 : f32
    %220 = vector.broadcast %cst_43 : f32 to vector<2x256xf32>
    %221 = arith.maximumf %154, %220 : vector<2x256xf32>
    %222 = arith.addf %219, %221 : vector<2x256xf32>
    %cst_44 = arith.constant 0.000000e+00 : f32
    %223 = vector.broadcast %cst_44 : f32 to vector<2x256xf32>
    %224 = arith.cmpf ogt, %222, %223 : vector<2x256xf32>
    %225 = arith.extui %224 : vector<2x256xi1> to vector<2x256xi8>
    %c1_45 = arith.constant 1 : index
    %c0_46 = arith.constant 0 : index
    %c0_47 = arith.constant 0 : index
    %c0_48 = arith.constant 0 : index
    %226 = vector.load %arg5[%c1_45, %c0_46, %c0_47, %c0_48] : memref<2x4x2x256xi8, #tpu.memory_space<vmem>>, vector<1x1x2x256xi8>
    %227 = vector.shape_cast %226 : vector<1x1x2x256xi8> to vector<2x256xi8>
    %228 = vector.shape_cast %225 : vector<2x256xi8> to vector<1x1x2x256xi8>
    tpu.vector_store %arg5[%c1_45, %c0_46, %c0_47, %c0_48], %228 {strides = array<i32>} : memref<2x4x2x256xi8, #tpu.memory_space<vmem>>, vector<1x1x2x256xi8>,
    %229 = vector.broadcast %211 : f32 to vector<2x256xf32>
    %230 = arith.mulf %161, %229 : vector<2x256xf32>
    %231 = vector.broadcast %215 : f32 to vector<2x256xf32>
    %232 = arith.addf %230, %231 : vector<2x256xf32>
    %cst_49 = arith.constant 0.000000e+00 : f32
    %233 = vector.broadcast %cst_49 : f32 to vector<2x256xf32>
    %234 = arith.maximumf %161, %233 : vector<2x256xf32>
    %235 = arith.addf %232, %234 : vector<2x256xf32>
    %cst_50 = arith.constant 0.000000e+00 : f32
    %236 = vector.broadcast %cst_50 : f32 to vector<2x256xf32>
    %237 = arith.cmpf ogt, %235, %236 : vector<2x256xf32>
    %238 = arith.extui %237 : vector<2x256xi1> to vector<2x256xi8>
    %c1_51 = arith.constant 1 : index
    %c1_52 = arith.constant 1 : index
    %c0_53 = arith.constant 0 : index
    %c0_54 = arith.constant 0 : index
    %239 = vector.load %arg5[%c1_51, %c1_52, %c0_53, %c0_54] : memref<2x4x2x256xi8, #tpu.memory_space<vmem>>, vector<1x1x2x256xi8>
    %240 = vector.shape_cast %239 : vector<1x1x2x256xi8> to vector<2x256xi8>
    %241 = vector.shape_cast %238 : vector<2x256xi8> to vector<1x1x2x256xi8>
    tpu.vector_store %arg5[%c1_51, %c1_52, %c0_53, %c0_54], %241 {strides = array<i32>} : memref<2x4x2x256xi8, #tpu.memory_space<vmem>>, vector<1x1x2x256xi8>,
    %242 = vector.broadcast %211 : f32 to vector<2x256xf32>
    %243 = arith.mulf %168, %242 : vector<2x256xf32>
    %244 = vector.broadcast %215 : f32 to vector<2x256xf32>
    %245 = arith.addf %243, %244 : vector<2x256xf32>
    %cst_55 = arith.constant 0.000000e+00 : f32
    %246 = vector.broadcast %cst_55 : f32 to vector<2x256xf32>
    %247 = arith.maximumf %168, %246 : vector<2x256xf32>
    %248 = arith.addf %245, %247 : vector<2x256xf32>
    %cst_56 = arith.constant 0.000000e+00 : f32
    %249 = vector.broadcast %cst_56 : f32 to vector<2x256xf32>
    %250 = arith.cmpf ogt, %248, %249 : vector<2x256xf32>
    %251 = arith.extui %250 : vector<2x256xi1> to vector<2x256xi8>
    %c1_57 = arith.constant 1 : index
    %c2_58 = arith.constant 2 : index
    %c0_59 = arith.constant 0 : index
    %c0_60 = arith.constant 0 : index
    %252 = vector.load %arg5[%c1_57, %c2_58, %c0_59, %c0_60] : memref<2x4x2x256xi8, #tpu.memory_space<vmem>>, vector<1x1x2x256xi8>
    %253 = vector.shape_cast %252 : vector<1x1x2x256xi8> to vector<2x256xi8>
    %254 = vector.shape_cast %251 : vector<2x256xi8> to vector<1x1x2x256xi8>
    tpu.vector_store %arg5[%c1_57, %c2_58, %c0_59, %c0_60], %254 {strides = array<i32>} : memref<2x4x2x256xi8, #tpu.memory_space<vmem>>, vector<1x1x2x256xi8>,
    %255 = vector.broadcast %211 : f32 to vector<2x256xf32>
    %256 = arith.mulf %181, %255 : vector<2x256xf32>
    %257 = vector.broadcast %215 : f32 to vector<2x256xf32>
    %258 = arith.addf %256, %257 : vector<2x256xf32>
    %cst_61 = arith.constant 0.000000e+00 : f32
    %259 = vector.broadcast %cst_61 : f32 to vector<2x256xf32>
    %260 = arith.maximumf %181, %259 : vector<2x256xf32>
    %261 = arith.addf %258, %260 : vector<2x256xf32>
    %cst_62 = arith.constant 0.000000e+00 : f32
    %262 = vector.broadcast %cst_62 : f32 to vector<2x256xf32>
    %263 = arith.cmpf ogt, %261, %262 : vector<2x256xf32>
    %264 = arith.extui %263 : vector<2x256xi1> to vector<2x256xi8>
    %c1_63 = arith.constant 1 : index
    %c3_64 = arith.constant 3 : index
    %c0_65 = arith.constant 0 : index
    %c0_66 = arith.constant 0 : index
    %265 = vector.load %arg5[%c1_63, %c3_64, %c0_65, %c0_66] : memref<2x4x2x256xi8, #tpu.memory_space<vmem>>, vector<1x1x2x256xi8>
    %266 = vector.shape_cast %265 : vector<1x1x2x256xi8> to vector<2x256xi8>
    %267 = vector.shape_cast %264 : vector<2x256xi8> to vector<1x1x2x256xi8>
    tpu.vector_store %arg5[%c1_63, %c3_64, %c0_65, %c0_66], %267 {strides = array<i32>} : memref<2x4x2x256xi8, #tpu.memory_space<vmem>>, vector<1x1x2x256xi8>,
    return
  }
}

</mosaic_0001>

<bundles_post_ra>
// kernel: model_forward.1
= control target key start
LH: loop header
LB: loop body
LE: loop exit
PB: predicated region body
PF: predicated region fallthrough
CT: control target
= control target key end

     0   :  { %10 = vsyncpa [#allocation3], 0  ;;  %s1553_s0 = inlined_call_operand.vmem [shape: f32[18], index: 0, kind: input, shape index: {}]   ;;  %s1554_s1 = inlined_call_operand.vmem [shape: f32[2], index: 1, kind: input, shape index: {}]   ;;  %s1555_s2 = inlined_call_operand.vmem [shape: f32[2], index: 2, kind: input, shape index: {}]   ;;  %s1556_s3 = inlined_call_operand.vmem [shape: f32[2], index: 3, kind: input, shape index: {}]   ;;  %s1557_s4 = inlined_call_operand.vmem [shape: f32[2,256], index: 4, kind: input, shape index: {}]   ;;  %s1558_s5 = inlined_call_operand.vmem [shape: s8[2,4,2,256], index: 5, kind: output, shape index: {}]  }
   0x1   :  { %11 = vsyncpa [#allocation5], 0  ;;  %s29_s20 = sshll.u32 %s1554_s1, 4  ;;  %s30_s20 = int_to_ptr.vmem [resolvable:$true] %s29_s20 }
   0x2   :  { %12 = vsyncpa [#allocation8], 0  ;;  %s19_s23 = sshll.u32 %s1553_s0, 4  ;;  %s1062_s24 = scalar_lea.vmem %s30_s20, 16  ;;  %s20_s23 = int_to_ptr.vmem [resolvable:$true] %s19_s23 }
   0x3   :  { %p1063_p0 = scmp.ne.s32.totalorder %s30_s20, %s1062_s24  ;;  %p1067_p1 = scmp.lt.s32.totalorder %s30_s20, %s30_s20 }
   0x4   :  { %p1068_p2 = scmp.lt.s32.totalorder %s1062_s24, %s1062_s24 }
   0x6   :  { %p1069_p3 = por %p1068_p2, %p1067_p1 }
   0x8   :  { %p1070_p4 = pnand %p1069_p3, %p1063_p0 }
   0xa   :  { %1073 = shalt.err (!%p1070_p4)
}
   0xb   :  { %s1116_s25 = smov [#allocation4]   ;;  %s1074_s26 = scalar_lea.vmem %s20_s23, 16 }
   0xc   :  { %32 = dma.vmem_to_smem %s30_s20, 16, %s1116_s25, [#allocation5]  }
   0xd   :  { %p1075_p5 = scmp.ne.s32.totalorder %s20_s23, %s1074_s26  ;;  %p1079_p6 = scmp.lt.s32.totalorder %s20_s23, %s20_s23 }
   0xe   :  { %p1080_p7 = scmp.lt.s32.totalorder %s1074_s26, %s1074_s26 }
  0x10   :  { %p1081_p8 = por %p1080_p7, %p1079_p6 }
  0x12   :  { %p1082_p9 = pnand %p1081_p8, %p1075_p5 }
  0x14   :  { %1085 = shalt.err (!%p1082_p9)
}
  0x15   :  { %s1117_s1 = smov [#allocation2]   ;;  %s39_s28 = sshll.u32 %s1555_s2, 4  ;;  %s40_s28 = int_to_ptr.vmem [resolvable:$true] %s39_s28 }
  0x16   :  { %22 = dma.vmem_to_smem %s20_s23, 16, %s1117_s1, [#allocation3]  }
  0x17   :  { %s49_s6 = sshll.u32 %s1556_s3, 4  ;;  %s1086_s7 = scalar_lea.vmem %s40_s28, 16  ;;  %s50_s6 = int_to_ptr.vmem [resolvable:$true] %s49_s6 }
  0x18   :  { %p1087_p10 = scmp.ne.s32.totalorder %s40_s28, %s1086_s7  ;;  %p1091_p11 = scmp.lt.s32.totalorder %s40_s28, %s40_s28 }
  0x19   :  { %p1092_p12 = scmp.lt.s32.totalorder %s1086_s7, %s1086_s7 }
  0x1b   :  { %p1093_p13 = por %p1092_p12, %p1091_p11 }
  0x1d   :  { %p1094_p0 = pnand %p1093_p13, %p1087_p10 }
  0x1f   :  { %1097 = shalt.err (!%p1094_p0)
}
  0x20   :  { %s1118_s8 = smov [#allocation6]   ;;  %s1098_s9 = scalar_lea.vmem %s50_s6, 16 }
  0x21   :  { %42 = dma.vmem_to_smem %s40_s28, 16, %s1118_s8, [#allocation5]  }
  0x22   :  { %p1099_p1 = scmp.ne.s32.totalorder %s50_s6, %s1098_s9  ;;  %p1103_p2 = scmp.lt.s32.totalorder %s50_s6, %s50_s6 }
  0x23   :  { %p1104_p3 = scmp.lt.s32.totalorder %s1098_s9, %s1098_s9 }
  0x25   :  { %p1105_p4 = por %p1104_p3, %p1103_p2 }
  0x27   :  { %p1106_p5 = pnand %p1105_p4, %p1099_p1 }
  0x29   :  { %1109 = shalt.err (!%p1106_p5)
}
  0x2a   :  { %s1119_s2 = smov [#allocation7]  }
  0x2b   :  { %52 = dma.vmem_to_smem %s50_s6, 16, %s1119_s2, [#allocation8]  }
  0x2c   :  { %1110 = dma.done.wait [#allocation3], 16  }
  0x2d   :  { %1111 = vsyncadd [#allocation3], 4294967280 }
  0x2e   :  { %1112 = dma.done.wait [#allocation5], 32  }
  0x2f   :  { %1113 = vsyncadd [#allocation5], 4294967264 }
  0x30   :  { %1114 = dma.done.wait [#allocation8], 16  }
  0x31   :  { %1115 = vsyncadd [#allocation8], 4294967280 }
  0x32   :  { %67 = sfence }
  0x33   :  { %v75_v0 = vlaneseq  ;;  %v1120_v1 = vmov 1983009808   ;;  %v1174_v5 = vld [vmem:[%s1557_s4] sm:$0xf]  ;;  %s1121_s11 = smov 112   ;;  %s1122_s12 = smov 127  }
  0x34   :  { %v73_v2 = vunpack.c.l.s4 %v1120_v1  ;;  %s1123_s13 = smov 111   ;;  %s1181_s14 = sld [smem:[#allocation2 + $0x1]]  ;;  %vm249_vm7 = vcmask 1041408  }
  0x35   :  { %v1169_v3 = vshrl.u32 %v75_v0, 7  ;;  %s1183_s4 = sld [smem:[#allocation2 + $0x2]]  ;;  %s1007_s15 = sld [smem:[#allocation2 + $0x7]]  ;;  %v1201_v9 = vand.u32 127, %v75_v0 }
  0x36   :  { %v74_v4 = vunpack.c.0.s8 %v73_v2  ;;  %s127_s16 = sld [smem:[#allocation4]]  ;;  %s1185_s17 = sld [smem:[#allocation2 + $0xa]] }
  0x37   :  { %s1187_s18 = sld [smem:[#allocation2 + $0xb]]  ;;  %s1189_s19 = sld [smem:[#allocation2 + $0x10]]  ;;  %v1216_v11 = vadd.s32 128, %v1201_v9  ;;  %vm95_vm0 = vcmp.lt.s32.totalorder %v1201_v9, 112  ;;  %vm88_vm1 = vcmp.lt.s32.totalorder %v1201_v9, 127  ;;  %vm102_vm2 = vcmp.lt.s32.totalorder %v1201_v9, 111 }
  0x38   :  { %v1177_v6 = vsub.s32 %v74_v4, %v1169_v3  ;;  %s1024_s20 = sld [smem:[#allocation4 + $0x1]]  ;;  %s1191_s21 = sld [smem:[#allocation2 + $0x3]]  ;;  %v106_v34 = vand.u32 15, %v1201_v9 }
  0x39   :  { %s1193_s22 = sld [smem:[#allocation2 + $0x5]]  ;;  %s1195_s23 = sld [smem:[#allocation2 + $0x8]]  ;;  %v107_v26 = vand.u32 15, %v1216_v11  ;;  %vm111_vm5 = vcmp.lt.s32.totalorder %v1216_v11, 176 }
  0x3a   :  { %v78_v7 = vrot.slane %v1174_v5, %v1177_v6  ;;  %s1197_s24 = sld [smem:[#allocation2 + $0xe]]  ;;  %s1199_s25 = sld [smem:[#allocation2 + $0x11]]  ;;  %v152_v12 = vstv %s1181_s14  ;;  %vm1269_vm4 = vcmp.lt.s32.totalorder %v106_v34, 11 }
  0x3b   :  { %s1203_s26 = sld [smem:[#allocation2 + $0x6]]  ;;  %s1205_s1 = sld [smem:[#allocation2 + $0x4]]  ;;  %v150_v10 = vstv %s1007_s15  ;;  %v185_v15 = vstv %s1183_s4  ;;  %vm1253_vm3 = vcmp.lt.s32.totalorder %v107_v26, 11 }
  0x3c   :  { %91 = vrot.lane.b32.xlu1 %v78_v7, %s1121_s11  ;;  %82 = vrot.lane.b32.xlu0 %v78_v7, %s1122_s12  ;;  %v79_v8 = vcombine.high %v78_v7, %v78_v7  ;;  %s1207_s0 = sld [smem:[#allocation2 + $0xc]]  ;;  %s1209_s27 = sld [smem:[#allocation2 + $0xf]]  ;;  %v1223_v13 = vstv %s127_s16  ;;  %v151_v14 = vmul.f32 %v150_v10, %v1174_v5  ;;  %v598_v17 = vstv %s1185_s17  ;;  %vm113_vm6 = vmand %vm1253_vm3, %vm111_vm5 }
  0x3d   :  { %s1211_s28 = sld [smem:[#allocation2]]  ;;  %s1213_s29 = sld [smem:[#allocation2 + $0x9]]  ;;  %v596_v16 = vstv %s1189_s19  ;;  %v631_v18 = vstv %s1187_s18  ;;  %vm363_vm5 = vsmask.f32 256 }
  0x3e   :  { %s1218_s30 = sld [smem:[#allocation2 + $0xd]]  ;;  %v1232_v23 = vstv %s1024_s20  ;;  %v597_v27 = vmul.f32 %v596_v16, %v1174_v5  ;;  %v134_v28 = vstv %s1191_s21 }
  0x3f   :  { %v132_v19 = vstv %s1193_s22  ;;  %v168_v20 = vstv %s1195_s23 }
  0x40   :  { %93 = vrot.lane.b32.xlu1 %v79_v8, %s1121_s11  ;;  %84 = vrot.lane.b32.xlu0 %v79_v8, %s1122_s12  ;;  %v578_v24 = vstv %s1197_s24  ;;  %v614_v25 = vstv %s1199_s25  ;;  %v133_v31 = vmul.f32 %v132_v19, %v1174_v5  ;;  %v169_v32 = vmul.f32 %v168_v20, %v1174_v5  ;;  %s290_s11 = sld [smem:[#allocation6]] }
  0x41   :  { %v170_v29 = vstv %s1203_s26  ;;  %v128_v30 = vstv %s1205_s1  ;;  %v579_v35 = vmul.f32 %v578_v24, %v1174_v5  ;;  %v1248_v36 = vmul.f32 %v614_v25, %v1174_v5  ;;  %s296_s12 = sld [smem:[#allocation7]] }
  0x42   :  { %v580_v33 = vstv %s1207_s0  ;;  %v616_v37 = vstv %s1209_s27  ;;  %v1258_v43 = vmul.f32 %v128_v30, %v1174_v5 }
  0x43   :  { %v200_v38 = vstv %s1211_s28  ;;  %v646_v41 = vstv %s1213_s29 }
  0x44   :  { %100 = vrot.lane.b32.xlu1 %v79_v8, %s1123_s13  ;;  %98 = vrot.lane.b32.xlu0 %v78_v7, %s1123_s13  ;;  %v574_v44 = vstv %s1218_s30 }
  0xae   :  { %v92_v21 = vpop.permute.xlu1 %91  ;;  %v83_v22 = vpop.permute.xlu0 %82 }
  0xb2   :  { %v94_v39 = vpop.permute.xlu1 %93  ;;  %v85_v40 = vpop.permute.xlu0 %84 }
  0xb3   :  { %v96_v45 = vsel %vm95_vm0, %v92_v21, %v94_v39  ;;  %v97_v46 = vsel %vm95_vm0, %v94_v39, %v92_v21  ;;  %v89_v47 = vsel %vm88_vm1, %v83_v22, %v85_v40  ;;  %v90_v48 = vsel %vm88_vm1, %v85_v40, %v83_v22 }
  0xb4   :  { %v153_v49 = vmul.f32 %v152_v12, %v96_v45  ;;  %v154_v50 = vmul.f32 %v152_v12, %v97_v46  ;;  %v186_v52 = vmul.f32 %v185_v15, %v96_v45  ;;  %v187_v53 = vmul.f32 %v185_v15, %v97_v46 }
  0xb5   :  { %v599_v54 = vmul.f32 %v598_v17, %v96_v45  ;;  %v600_v55 = vmul.f32 %v598_v17, %v97_v46  ;;  %v135_v57 = vmul.f32 %v134_v28, %v89_v47  ;;  %v136_v58 = vmul.f32 %v134_v28, %v90_v48 }
  0xb6   :  { %v157_v56 = vcombine.low %v153_v49, %v154_v50  ;;  %v632_v60 = vmul.f32 %v631_v18, %v96_v45  ;;  %v171_v61 = vmul.f32 %v170_v29, %v89_v47  ;;  %v172_v62 = vmul.f32 %v170_v29, %v90_v48  ;;  %v101_v4 = vpop.permute.xlu1 %100  ;;  %v99_v7 = vpop.permute.xlu0 %98 }
  0xb7   :  { %v603_v59 = vcombine.low %v599_v54, %v600_v55  ;;  %v633_v0 = vmul.f32 %v631_v18, %v97_v46  ;;  %v139_v1 = vcombine.low %v135_v57, %v136_v58  ;;  %v581_v2 = vmul.f32 %v580_v33, %v89_v47 }
  0xb8   :  { %v164_v63 = vrot.slane %v157_v56, %v1177_v6  ;;  %v190_v8 = vcombine.low %v186_v52, %v187_v53  ;;  %v175_v12 = vcombine.low %v171_v61, %v172_v62  ;;  %v582_v15 = vmul.f32 %v580_v33, %v90_v48 }
  0xb9   :  { %v610_v10 = vrot.slane %v603_v59, %v1177_v6  ;;  %v146_v17 = vrot.slane %v139_v1, %v1177_v6  ;;  %v617_v19 = vmul.f32 %v616_v37, %v89_v47  ;;  %v618_v20 = vmul.f32 %v616_v37, %v90_v48 }
  0xba   :  { %v166_v16 = vadd.f32 %v164_v63, %v151_v14  ;;  %v182_v22 = vrot.slane %v175_v12, %v1177_v6  ;;  %v585_v24 = vcombine.low %v581_v2, %v582_v15  ;;  %v103_v18 = vsel %vm102_vm2, %v99_v7, %v101_v4 }
  0xbb   :  { %v612_v21 = vadd.f32 %v610_v10, %v597_v27  ;;  %v636_v25 = vcombine.low %v632_v60, %v633_v0  ;;  %v148_v26 = vadd.f32 %v146_v17, %v133_v31  ;;  %v621_v28 = vcombine.low %v617_v19, %v618_v20 }
  0xbc   :  { %v104_v29 = vsel %vm102_vm2, %v101_v4, %v99_v7  ;;  %v197_v30 = vrot.slane %v190_v8, %v1177_v6  ;;  %v184_v14 = vadd.f32 %v182_v22, %v169_v32  ;;  %v592_v33 = vrot.slane %v585_v24, %v1177_v6 }
  0xbd   :  { %v201_v34 = vmul.f32 %v200_v38, %v103_v18  ;;  %v628_v27 = vrot.slane %v621_v28, %v1177_v6  ;;  %v202_v37 = vmul.f32 %v200_v38, %v104_v29  ;;  %v647_v39 = vmul.f32 %v646_v41, %v103_v18 }
  0xbe   :  { %v575_v31 = vmul.f32 %v574_v44, %v1174_v5  ;;  %v594_v40 = vadd.f32 %v592_v33, %v579_v35  ;;  %v199_v9 = vadd.f32 %v197_v30, %v184_v14  ;;  %v648_v45 = vmul.f32 %v646_v41, %v104_v29 }
  0xbf   :  { %v1124_v46 = vmov 0.0   ;;  %v643_v47 = vrot.slane %v636_v25, %v1177_v6  ;;  %v630_v11 = vadd.f32 %v628_v27, %v1248_v36  ;;  %v205_v48 = vcombine.low %v201_v34, %v202_v37 }
  0xc0   :  { %v999_v32 = vsel %vm1269_vm4, 1.0, %v1124_v46  ;;  %v1000_v42 = vsel %vm113_vm6, 1.0, %v1124_v46  ;;  %v651_v49 = vcombine.low %v647_v39, %v648_v45  ;;  %v1295_v50 = vadd.f32 %v148_v26, %v1223_v13 }
  0xc1   :  { %v645_v38 = vadd.f32 %v643_v47, %v630_v11  ;;  %v212_v5 = vrot.slane %v205_v48, %v1177_v6  ;;  %v1300_v35 = vadd.f32 %v1223_v13, %v1258_v43  ;;  %v1303_v41 = vadd.f32 %v594_v40, %v1232_v23 }
  0xc2   :  { %v658_v44 = vrot.slane %v651_v49, %v1177_v6  ;;  %v228_v51 = vcombine.low %v999_v32, %v1000_v42  ;;  %v1307_v36 = vadd.f32 %v1232_v23, %v575_v31  ;;  %v1310_v52 = vadd.f32 %v166_v16, %v1223_v13 }
  0xc3   :  { %v214_v53 = vadd.f32 %v212_v5, %v199_v9  ;;  %v1313_v54 = vadd.f32 %v612_v21, %v1232_v23  ;;  %v219_v56 = vmul.f32 %v1300_v35, %v1300_v35  ;;  %v220_v57 = vmul.f32 %v1295_v50, %v1295_v50 }
  0xc4   :  { %v660_v55 = vadd.f32 %v658_v44, %v645_v38  ;;  %v235_v59 = vrot.slane %v228_v51, %v1177_v6  ;;  %v665_v60 = vmul.f32 %v1307_v36, %v1307_v36  ;;  %v666_v61 = vmul.f32 %v1303_v41, %v1303_v41 }
  0xc5   :  { %v1316_v43 = vadd.f32 %v214_v53, %v1223_v13  ;;  %v216_v13 = vadd.f32 %v1295_v50, %v1300_v35  ;;  %v222_v63 = vmul.f32 %v1310_v52, %v1310_v52  ;;  %v662_v0 = vadd.f32 %v1303_v41, %v1307_v36 }
  0xc6   :  { %v1323_v58 = vadd.f32 %v660_v55, %v1232_v23  ;;  %v668_v2 = vmul.f32 %v1313_v54, %v1313_v54  ;;  %v221_v8 = vadd.f32 %v220_v57, %v219_v56  ;;  %v667_v15 = vadd.f32 %v666_v61, %v665_v60 }
  0xc7   :  { %v217_v62 = vadd.f32 %v1316_v43, %v1310_v52  ;;  %v223_v23 = vmul.f32 %v1316_v43, %v1316_v43  ;;  %vm362_vm0 = vcmask 1040384   ;;  %vm365_vm6 = vcmask 1041409  }
  0xc8   :  { %v663_v1 = vadd.f32 %v1323_v58, %v1313_v54  ;;  %v669_v4 = vmul.f32 %v1323_v58, %v1323_v58 }
  0xc9   :  { %v218_v7 = vadd.f32 %v217_v62, %v216_v13  ;;  %v224_v10 = vadd.f32 %v223_v23, %v222_v63 }
  0xca   :  { %v664_v12 = vadd.f32 %v663_v1, %v662_v0  ;;  %v670_v16 = vadd.f32 %v669_v4, %v668_v2 }
  0xcb   :  { %v237_v17 = vmul.f32 %v235_v59, %v218_v7  ;;  %v225_v19 = vadd.f32 %v224_v10, %v221_v8 }
  0xcc   :  { %v672_v20 = vmul.f32 %v664_v12, %v235_v59  ;;  %v671_v21 = vadd.f32 %v670_v16, %v667_v15 }
  0xcd   :  { %v245_v22 = vrot.slane %v237_v17, %v1177_v6  ;;  %v262_v24 = vmul.f32 %v235_v59, %v225_v19 }
  0xce   :  { %v680_v18 = vrot.slane %v672_v20, %v1177_v6  ;;  %v696_v25 = vmul.f32 %v671_v21, %v235_v59  ;;  %v304_v21 = vmax.f32 %v1300_v35, 0.0 }
  0xcf   :  { %v246_v26 = vcombine.high %v245_v22, %v245_v22  ;;  %v270_v28 = vrot.slane %v262_v24, %v1177_v6  ;;  %v250_v14 = vsel %vm249_vm7, %v245_v22, 0.0 }
  0xd0   :  { %v681_v29 = vcombine.high %v680_v18, %v680_v18  ;;  %v704_v30 = vrot.slane %v696_v25, %v1177_v6  ;;  %v684_v45 = vsel %vm249_vm7, %v680_v18, 0.0 }
  0xd1   :  { %v251_v33 = vsel %vm249_vm7, %v246_v26, 0.0  ;;  %v271_v34 = vcombine.high %v270_v28, %v270_v28  ;;  %v274_v37 = vsel %vm249_vm7, %v270_v28, 0.0  ;;  %v374_v28 = vmax.f32 %v1295_v50, 0.0 }
  0xd2   :  { %v252_v27 = vadd.f32 %v251_v33, %v250_v14  ;;  %v685_v31 = vsel %vm249_vm7, %v681_v29, 0.0  ;;  %v705_v40 = vcombine.high %v704_v30, %v704_v30  ;;  %v708_v47 = vsel %vm249_vm7, %v704_v30, 0.0 }
  0xd3   :  { %v275_v39 = vsel %vm249_vm7, %v271_v34, 0.0  ;;  %v686_v46 = vadd.f32 %v685_v31, %v684_v45  ;;  %v438_v29 = vmax.f32 %v1310_v52, 0.0  ;;  %v502_v30 = vmax.f32 %v1316_v43, 0.0 }
  0xd4   :  { %253 = vadd.xlane.f32.xlu0 %v252_v27  ;;  %v276_v9 = vadd.f32 %v275_v39, %v274_v37  ;;  %v709_v32 = vsel %vm249_vm7, %v705_v40, 0.0  ;;  %v1125_v40 = vmov 1966171168   ;;  %vm366_vm7 = vsmask.f32 1280 }
  0xd5   :  { %v710_v11 = vadd.f32 %v709_v32, %v708_v47 }
  0xd6   :  { %277 = vadd.xlane.f32.xlu1 %v276_v9  ;;  %v322_v9 = vunpack.c.l.s4 %v1125_v40 }
  0xd8   :  { %687 = vadd.xlane.f32.xlu0 %v686_v46 }
  0xdc   :  { %711 = vadd.xlane.f32.xlu0 %v710_v11 }
 0x161   :  { %v254_v48 = vpop.xlane.xlu0 %253 }
 0x162   :  { %v255_v42 = vrot.slane %v254_v48, 4 }
 0x163   :  { %v278_v49 = vpop.xlane.xlu1 %277 }
 0x164   :  { %v256_v38 = vadd.f32 %v255_v42, %v254_v48  ;;  %v279_v5 = vrot.slane %v278_v49, 4 }
 0x165   :  { %v688_v13 = vpop.xlane.xlu0 %687 }
 0x166   :  { %v257_v44 = vrot.slane %v256_v38, 2  ;;  %v280_v51 = vadd.f32 %v279_v5, %v278_v49  ;;  %v689_v63 = vrot.slane %v688_v13, 4  ;;  %v323_v49 = vunpack.c.0.s8 %v322_v9 }
 0x168   :  { %v281_v53 = vrot.slane %v280_v51, 2  ;;  %v258_v55 = vadd.f32 %v257_v44, %v256_v38  ;;  %v690_v0 = vadd.f32 %v689_v63, %v688_v13 }
 0x169   :  { %v712_v62 = vpop.xlane.xlu0 %711 }
 0x16a   :  { %v282_v56 = vadd.f32 %v281_v53, %v280_v51  ;;  %v259_v57 = vrot.slane %v258_v55, 1  ;;  %v713_v23 = vrot.slane %v712_v62, 4  ;;  %v691_v2 = vrot.slane %v690_v0, 2 }
 0x16c   :  { %v260_v59 = vadd.f32 %v259_v57, %v258_v55  ;;  %v283_v60 = vrot.slane %v282_v56, 1  ;;  %v714_v1 = vadd.f32 %v713_v23, %v712_v62  ;;  %v692_v8 = vadd.f32 %v691_v2, %v690_v0 }
 0x16e   :  { %1035 = vpush %v260_v59  ;;  %v284_v61 = vadd.f32 %v283_v60, %v282_v56  ;;  %v715_v4 = vrot.slane %v714_v1, 2  ;;  %v693_v12 = vrot.slane %v692_v8, 1  ;;  %v1388_v59 = vsub.s32 %v323_v49, %v1169_v3 }
 0x170   :  { %1037 = vpush %v284_v61  ;;  %v716_v10 = vadd.f32 %v715_v4, %v714_v1  ;;  %v694_v17 = vadd.f32 %v693_v12, %v692_v8 }
 0x172   :  { %v717_v15 = vrot.slane %v716_v10, 1 }
 0x174   :  { %v718_v19 = vadd.f32 %v717_v15, %v716_v10 }
 0x19f   :  { %s1036_s6 = spop %1035 }
 0x1a0   :  { %s1358_s7 = smul.f32 0.0010330578, %s1036_s6 }
 0x1a1   :  { %s1038_s8 = spop %1037 }
 0x1a2   :  { %s288_s9 = smul.f32 %s1358_s7, %s1358_s7 }
 0x1a3   :  { %s287_s2 = smul.f32 0.0010330578, %s1038_s8 }
 0x1a5   :  { %s289_s3 = ssub.f32 %s287_s2, %s288_s9 }
 0x1a7   :  { %s291_s10 = sadd.f32 1e-05, %s289_s3 }
 0x1a9   :  { %v292_v7 = vstv %s291_s10 }
 0x1aa   :  { %1058 = vrsqrt.f32 %v292_v7 }
 0x1b4   :  { %v1059_v16 = vpop.eup %1058 }
 0x1b5   :  { %1039 = vpush %v1059_v16 }
 0x1b6   :  { %1041 = vpush %v694_v17 }
 0x1b7   :  { %1043 = vpush %v718_v19 }
 0x1e6   :  { %s1040_s13 = spop %1039 }
 0x1e7   :  { %s295_s14 = smul.f32 %s1040_s13, %s290_s11  ;;  %s1042_s4 = spop %1041 }
 0x1e8   :  { %s1362_s15 = smul.f32 0.0010330578, %s1042_s4  ;;  %s1044_s17 = spop %1043 }
 0x1e9   :  { %s297_s16 = smul.f32 %s295_s14, %s1358_s7  ;;  %v300_v20 = vstv %s295_s14  ;;  %s1025_s11 = sld [smem:[#allocation6 + $0x1]] }
 0x1ea   :  { %s722_s18 = smul.f32 %s1362_s15, %s1362_s15  ;;  %v301_v22 = vmul.f32 %v300_v20, %v1300_v35  ;;  %v372_v24 = vmul.f32 %v300_v20, %v1295_v50  ;;  %v436_v18 = vmul.f32 %v300_v20, %v1310_v52  ;;  %v500_v25 = vmul.f32 %v300_v20, %v1316_v43 }
 0x1eb   :  { %s298_s19 = ssub.f32 %s296_s12, %s297_s16  ;;  %s721_s20 = smul.f32 0.0010330578, %s1044_s17  ;;  %v1126_v50 = vmov 0  }
 0x1ec   :  { %s1026_s12 = sld [smem:[#allocation7 + $0x1]] }
 0x1ed   :  { %s299_s21 = sadd.f32 1.029, %s298_s19 }
 0x1ee   :  { %s723_s22 = ssub.f32 %s721_s20, %s722_s18 }
 0x1ef   :  { %v302_v26 = vstv %s299_s21 }
 0x1f0   :  { %v303_v14 = vadd.f32 %v302_v26, %v301_v22  ;;  %v373_v33 = vadd.f32 %v372_v24, %v302_v26  ;;  %v437_v34 = vadd.f32 %v436_v18, %v302_v26  ;;  %v501_v27 = vadd.f32 %v500_v25, %v302_v26  ;;  %s725_s23 = sadd.f32 1e-05, %s723_s22 }
 0x1f2   :  { %v305_v35 = vadd.f32 %v304_v21, %v303_v14  ;;  %v375_v37 = vadd.f32 %v374_v28, %v373_v33  ;;  %v439_v39 = vadd.f32 %v438_v29, %v437_v34  ;;  %v503_v31 = vadd.f32 %v502_v30, %v501_v27 }
 0x1f3   :  { %v726_v45 = vstv %s725_s23 }
 0x1f4   :  { %vm306_vm8 = vcmp.gt.f32.partialorder %v305_v35, 0.0  ;;  %vm376_vm9 = vcmp.gt.f32.partialorder %v375_v37, 0.0  ;;  %vm440_vm10 = vcmp.gt.f32.partialorder %v439_v39, 0.0  ;;  %vm504_vm11 = vcmp.gt.f32.partialorder %v503_v31, 0.0 }
 0x1f5   :  { %v307_v52 = vsel %vm306_vm8, 1, %v1126_v50  ;;  %v377_v43 = vsel %vm376_vm9, 1, %v1126_v50  ;;  %v441_v46 = vsel %vm440_vm10, 1, %v1126_v50  ;;  %v505_v32 = vsel %vm504_vm11, 1, %v1126_v50 }
 0x1f6   :  { %v314_v47 = vrot.slane %v307_v52, %v1177_v6  ;;  %v384_v11 = vrot.slane %v377_v43, %v1177_v6  ;;  %v448_v48 = vrot.slane %v441_v46, %v1177_v6  ;;  %v512_v42 = vrot.slane %v505_v32, %v1177_v6  ;;  %v369_v43 = vld [vmem:[%s1558_s5] sm:$0x3]  ;;  %v1009_v46 = vld [vmem:[%s1558_s5 + $0x2] sm:$0x3] }
 0x1f7   :  { %1060 = vrsqrt.f32 %v726_v45 }
 0x1f8   :  { %vm315_vm12 = vcmp.ne.s32.totalorder %v314_v47, 0  ;;  %vm385_vm13 = vcmp.ne.s32.totalorder %v384_v11, 0  ;;  %vm449_vm14 = vcmp.ne.s32.totalorder %v448_v48, 0  ;;  %vm513_vm15 = vcmp.ne.s32.totalorder %v512_v42, 0  ;;  %v1011_v48 = vld [vmem:[%s1558_s5 + $0x4] sm:$0x3] }
 0x1f9   :  { %v316_v38 = vsel %vm315_vm12, 1, %v1126_v50  ;;  %v386_v5 = vsel %vm385_vm13, 1, %v1126_v50  ;;  %v450_v44 = vsel %vm449_vm14, 1, %v1126_v50  ;;  %v514_v51 = vsel %vm513_vm15, 1, %v1126_v50  ;;  %vm1412_vm13 = vmand %vm362_vm0, %vm363_vm5 }
 0x1fa   :  { %v317_v53 = vpack.c.b16 %v316_v38, %v316_v38  ;;  %v387_v55 = vpack.c.b16 %v386_v5, %v386_v5  ;;  %v451_v56 = vpack.c.b16 %v450_v44, %v450_v44  ;;  %v515_v57 = vpack.c.b16 %v514_v51, %v514_v51  ;;  %v1013_v38 = vld [vmem:[%s1558_s5 + $0x6] sm:$0x3] }
 0x1fc   :  { %v318_v60 = vpack.c.b8 %v317_v53, %v317_v53  ;;  %v388_v61 = vpack.c.b8 %v387_v55, %v387_v55  ;;  %v452_v13 = vpack.c.b8 %v451_v56, %v451_v56  ;;  %v516_v62 = vpack.c.b8 %v515_v57, %v515_v57 }
 0x1fd   :  { %v738_v57 = vmax.f32 %v1307_v36, 0.0 }
 0x1fe   :  { %vm319_vm1 = vnez %v318_v60  ;;  %vm389_vm2 = vnez %v388_v61  ;;  %vm453_vm3 = vnez %v452_v13  ;;  %vm517_vm4 = vnez %v516_v62 }
 0x1ff   :  { %v320_v63 = vsel %vm319_vm1, 16843009, %v1126_v50  ;;  %v390_v23 = vsel %vm389_vm2, 16843009, %v1126_v50  ;;  %v454_v0 = vsel %vm453_vm3, 16843009, %v1126_v50  ;;  %vm367_vm1 = vmand %vm365_vm6, %vm366_vm7 }
 0x200   :  { %v327_v1 = vrot.slane %v320_v63, %v1388_v59  ;;  %v397_v3 = vrot.slane %v390_v23, %v1388_v59  ;;  %v461_v2 = vrot.slane %v454_v0, %v1388_v59  ;;  %v518_v4 = vsel %vm517_vm4, 16843009, %v1126_v50  ;;  %vm1426_vm0 = vmor %vm367_vm1, %vm1412_vm13 }
 0x201   :  { %v1061_v7 = vpop.eup %1060  ;;  %v525_v8 = vrot.slane %v518_v4, %v1388_v59  ;;  %v802_v23 = vmax.f32 %v1303_v41, 0.0  ;;  %v866_v0 = vmax.f32 %v1313_v54, 0.0 }
 0x202   :  { %v328_v10 = vcombine.high %v327_v1, %v327_v1  ;;  %v335_v12 = vrot.slane %v327_v1, %v1388_v59  ;;  %v398_v15 = vcombine.high %v397_v3, %v397_v3  ;;  %v405_v16 = vrot.slane %v397_v3, %v1388_v59  ;;  %1045 = vpush %v1061_v7 }
 0x203   :  { %v462_v17 = vcombine.high %v461_v2, %v461_v2  ;;  %v469_v19 = vrot.slane %v461_v2, %v1388_v59  ;;  %v526_v20 = vcombine.high %v525_v8, %v525_v8  ;;  %v533_v21 = vrot.slane %v525_v8, %v1388_v59 }
 0x204   :  { %v342_v22 = vrot.slane %v328_v10, %v1388_v59  ;;  %vm343_vm8 = vnez %v335_v12  ;;  %v412_v24 = vrot.slane %v398_v15, %v1388_v59  ;;  %vm413_vm9 = vnez %v405_v16 }
 0x205   :  { %v345_v18 = vsel %vm343_vm8, 16843009, %v1126_v50  ;;  %v415_v25 = vsel %vm413_vm9, 16843009, %v1126_v50  ;;  %v476_v26 = vrot.slane %v462_v17, %v1388_v59  ;;  %vm477_vm10 = vnez %v469_v19 }
 0x206   :  { %vm344_vm11 = vnez %v342_v22  ;;  %vm414_vm12 = vnez %v412_v24  ;;  %v479_v28 = vsel %vm477_vm10, 16843009, %v1126_v50  ;;  %v540_v29 = vrot.slane %v526_v20, %v1388_v59 }
 0x207   :  { %v346_v30 = vsel %vm344_vm11, 16843009, %v1126_v50  ;;  %v416_v33 = vsel %vm414_vm12, 16843009, %v1126_v50  ;;  %vm478_vm14 = vnez %v476_v26  ;;  %vm541_vm15 = vnez %v533_v21 }
 0x208   :  { %v347_v34 = vcombine.low %v345_v18, %v346_v30  ;;  %v417_v27 = vcombine.low %v415_v25, %v416_v33  ;;  %v480_v35 = vsel %vm478_vm14, 16843009, %v1126_v50  ;;  %vm542_vm2 = vnez %v540_v29 }
 0x209   :  { %v481_v37 = vcombine.low %v479_v28, %v480_v35  ;;  %v543_v39 = vsel %vm541_vm15, 16843009, %v1126_v50  ;;  %v544_v31 = vsel %vm542_vm2, 16843009, %v1126_v50  ;;  %v930_v1 = vmax.f32 %v1323_v58, 0.0 }
 0x20a   :  { %v354_v40 = vrot.slane %v347_v34, %v1388_v59  ;;  %v424_v9 = vrot.slane %v417_v27, %v1388_v59  ;;  %v545_v45 = vcombine.low %v543_v39, %v544_v31 }
 0x20b   :  { %v488_v32 = vrot.slane %v481_v37, %v1388_v59 }
 0x20c   :  { %v361_v47 = vrot.slane %v354_v40, %v1388_v59  ;;  %v431_v11 = vrot.slane %v424_v9, %v1388_v59  ;;  %v552_v42 = vrot.slane %v545_v45, %v1388_v59 }
 0x20d   :  { %v495_v49 = vrot.slane %v488_v32, %v1388_v59 }
 0x20e   :  { %v370_v5 = vsel %vm1426_vm0, %v361_v47, %v369_v43  ;;  %v434_v44 = vsel %vm1426_vm0, %v431_v11, %v1009_v46  ;;  %v559_v51 = vrot.slane %v552_v42, %v1388_v59 }
 0x20f   :  { %371 = vst [vmem:[%s1558_s5] sm:$0x3] %v370_v5  ;;  %1010 = vst [vmem:[%s1558_s5 + $0x2] sm:$0x3] %v434_v44  ;;  %v498_v53 = vsel %vm1426_vm0, %v495_v49, %v1011_v48 }
 0x210   :  { %1012 = vst [vmem:[%s1558_s5 + $0x4] sm:$0x3] %v498_v53  ;;  %v562_v55 = vsel %vm1426_vm0, %v559_v51, %v1013_v38 }
 0x211   :  { %1014 = vst [vmem:[%s1558_s5 + $0x6] sm:$0x3] %v562_v55 }
 0x233   :  { %s1046_s13 = spop %1045 }
 0x234   :  { %s729_s14 = smul.f32 %s1046_s13, %s1025_s11 }
 0x236   :  { %s731_s4 = smul.f32 %s729_s14, %s1362_s15  ;;  %v734_v56 = vstv %s729_s14 }
 0x237   :  { %v735_v60 = vmul.f32 %v734_v56, %v1307_v36  ;;  %v800_v61 = vmul.f32 %v734_v56, %v1303_v41  ;;  %v864_v13 = vmul.f32 %v734_v56, %v1313_v54  ;;  %v928_v62 = vmul.f32 %v734_v56, %v1323_v58 }
 0x238   :  { %s732_s16 = ssub.f32 %s1026_s12, %s731_s4 }
 0x23a   :  { %s733_s17 = sadd.f32 1.029, %s732_s16 }
 0x23c   :  { %v736_v63 = vstv %s733_s17 }
 0x23d   :  { %v737_v3 = vadd.f32 %v736_v63, %v735_v60  ;;  %v801_v2 = vadd.f32 %v800_v61, %v736_v63  ;;  %v865_v4 = vadd.f32 %v864_v13, %v736_v63  ;;  %v929_v7 = vadd.f32 %v928_v62, %v736_v63 }
 0x23f   :  { %v739_v8 = vadd.f32 %v738_v57, %v737_v3  ;;  %v803_v10 = vadd.f32 %v802_v23, %v801_v2  ;;  %v867_v36 = vadd.f32 %v866_v0, %v865_v4  ;;  %v931_v12 = vadd.f32 %v930_v1, %v929_v7  ;;  %v1027_v2 = vld [vmem:[%s1558_s5 + $0x8] sm:$0x3]  ;;  %v1029_v4 = vld [vmem:[%s1558_s5 + $0xa] sm:$0x3] }
 0x241   :  { %vm740_vm3 = vcmp.gt.f32.partialorder %v739_v8, 0.0  ;;  %vm804_vm4 = vcmp.gt.f32.partialorder %v803_v10, 0.0  ;;  %vm868_vm5 = vcmp.gt.f32.partialorder %v867_v36, 0.0  ;;  %vm932_vm6 = vcmp.gt.f32.partialorder %v931_v12, 0.0 }
 0x242   :  { %v741_v15 = vsel %vm740_vm3, 1, %v1126_v50  ;;  %v805_v41 = vsel %vm804_vm4, 1, %v1126_v50  ;;  %v869_v54 = vsel %vm868_vm5, 1, %v1126_v50  ;;  %v933_v58 = vsel %vm932_vm6, 1, %v1126_v50 }
 0x243   :  { %v748_v16 = vrot.slane %v741_v15, %v1177_v6  ;;  %v812_v17 = vrot.slane %v805_v41, %v1177_v6  ;;  %v876_v19 = vrot.slane %v869_v54, %v1177_v6  ;;  %v940_v20 = vrot.slane %v933_v58, %v1177_v6  ;;  %v1033_v15 = vld [vmem:[%s1558_s5 + $0xe] sm:$0x3] }
 0x245   :  { %vm749_vm7 = vcmp.ne.s32.totalorder %v748_v16, 0  ;;  %vm813_vm8 = vcmp.ne.s32.totalorder %v812_v17, 0  ;;  %vm877_vm9 = vcmp.ne.s32.totalorder %v876_v19, 0  ;;  %vm941_vm10 = vcmp.ne.s32.totalorder %v940_v20, 0 }
 0x246   :  { %v750_v21 = vsel %vm749_vm7, 1, %v1126_v50  ;;  %v814_v22 = vsel %vm813_vm8, 1, %v1126_v50  ;;  %v878_v24 = vsel %vm877_vm9, 1, %v1126_v50  ;;  %v942_v18 = vsel %vm941_vm10, 1, %v1126_v50 }
 0x247   :  { %v751_v25 = vpack.c.b16 %v750_v21, %v750_v21  ;;  %v815_v26 = vpack.c.b16 %v814_v22, %v814_v22  ;;  %v879_v28 = vpack.c.b16 %v878_v24, %v878_v24  ;;  %v943_v29 = vpack.c.b16 %v942_v18, %v942_v18 }
 0x249   :  { %v752_v30 = vpack.c.b8 %v751_v25, %v751_v25  ;;  %v816_v14 = vpack.c.b8 %v815_v26, %v815_v26  ;;  %v880_v33 = vpack.c.b8 %v879_v28, %v879_v28  ;;  %v944_v6 = vpack.c.b8 %v943_v29, %v943_v29 }
 0x24b   :  { %vm753_vm11 = vnez %v752_v30  ;;  %vm817_vm12 = vnez %v816_v14  ;;  %vm881_vm13 = vnez %v880_v33  ;;  %vm945_vm14 = vnez %v944_v6 }
 0x24c   :  { %v754_v34 = vsel %vm753_vm11, 16843009, %v1126_v50  ;;  %v818_v27 = vsel %vm817_vm12, 16843009, %v1126_v50  ;;  %v882_v35 = vsel %vm881_vm13, 16843009, %v1126_v50 }
 0x24d   :  { %v761_v37 = vrot.slane %v754_v34, %v1388_v59  ;;  %v825_v39 = vrot.slane %v818_v27, %v1388_v59  ;;  %v889_v31 = vrot.slane %v882_v35, %v1388_v59  ;;  %v946_v40 = vsel %vm945_vm14, 16843009, %v1126_v50 }
 0x24e   :  { %v953_v9 = vrot.slane %v946_v40, %v1388_v59 }
 0x24f   :  { %v762_v45 = vcombine.high %v761_v37, %v761_v37  ;;  %v769_v43 = vrot.slane %v761_v37, %v1388_v59  ;;  %v826_v46 = vcombine.high %v825_v39, %v825_v39  ;;  %v833_v32 = vrot.slane %v825_v39, %v1388_v59 }
 0x250   :  { %v890_v47 = vcombine.high %v889_v31, %v889_v31  ;;  %v897_v11 = vrot.slane %v889_v31, %v1388_v59  ;;  %v954_v48 = vcombine.high %v953_v9, %v953_v9  ;;  %v961_v42 = vrot.slane %v953_v9, %v1388_v59 }
 0x251   :  { %v776_v49 = vrot.slane %v762_v45, %v1388_v59  ;;  %vm777_vm15 = vnez %v769_v43  ;;  %v840_v38 = vrot.slane %v826_v46, %v1388_v59  ;;  %vm841_vm1 = vnez %v833_v32 }
 0x252   :  { %v779_v5 = vsel %vm777_vm15, 16843009, %v1126_v50  ;;  %v843_v44 = vsel %vm841_vm1, 16843009, %v1126_v50  ;;  %v904_v51 = vrot.slane %v890_v47, %v1388_v59  ;;  %vm905_vm2 = vnez %v897_v11 }
 0x253   :  { %vm778_vm3 = vnez %v776_v49  ;;  %vm842_vm4 = vnez %v840_v38  ;;  %v907_v53 = vsel %vm905_vm2, 16843009, %v1126_v50  ;;  %v968_v55 = vrot.slane %v954_v48, %v1388_v59 }
 0x254   :  { %v780_v56 = vsel %vm778_vm3, 16843009, %v1126_v50  ;;  %v844_v57 = vsel %vm842_vm4, 16843009, %v1126_v50  ;;  %vm906_vm5 = vnez %v904_v51  ;;  %vm969_vm6 = vnez %v961_v42 }
 0x255   :  { %v781_v60 = vcombine.low %v779_v5, %v780_v56  ;;  %v845_v61 = vcombine.low %v843_v44, %v844_v57  ;;  %v908_v13 = vsel %vm906_vm5, 16843009, %v1126_v50  ;;  %vm970_vm7 = vnez %v968_v55 }
 0x256   :  { %v909_v62 = vcombine.low %v907_v53, %v908_v13  ;;  %v971_v63 = vsel %vm969_vm6, 16843009, %v1126_v50  ;;  %v972_v23 = vsel %vm970_vm7, 16843009, %v1126_v50  ;;  %v1031_v50 = vld [vmem:[%s1558_s5 + $0xc] sm:$0x3] }
 0x257   :  { %v788_v0 = vrot.slane %v781_v60, %v1388_v59  ;;  %v852_v1 = vrot.slane %v845_v61, %v1388_v59  ;;  %v973_v3 = vcombine.low %v971_v63, %v972_v23 }
 0x258   :  { %v916_v7 = vrot.slane %v909_v62, %v1388_v59 }
 0x259   :  { %v795_v8 = vrot.slane %v788_v0, %v1388_v59  ;;  %v859_v10 = vrot.slane %v852_v1, %v1388_v59  ;;  %v980_v36 = vrot.slane %v973_v3, %v1388_v59 }
 0x25a   :  { %v923_v12 = vrot.slane %v916_v7, %v1388_v59 }
 0x25b   :  { %v798_v41 = vsel %vm1426_vm0, %v795_v8, %v1027_v2  ;;  %v862_v54 = vsel %vm1426_vm0, %v859_v10, %v1029_v4  ;;  %v987_v58 = vrot.slane %v980_v36, %v1388_v59 }
 0x25c   :  { %1028 = vst [vmem:[%s1558_s5 + $0x8] sm:$0x3] %v798_v41  ;;  %1030 = vst [vmem:[%s1558_s5 + $0xa] sm:$0x3] %v862_v54  ;;  %v926_v16 = vsel %vm1426_vm0, %v923_v12, %v1031_v50 }
 0x25d   :  { %1032 = vst [vmem:[%s1558_s5 + $0xc] sm:$0x3] %v926_v16  ;;  %v990_v17 = vsel %vm1426_vm0, %v987_v58, %v1033_v15 }
 0x25e   :  { %1034 = vst [vmem:[%s1558_s5 + $0xe] sm:$0x3] %v990_v17 }
 0x25f   :  { %996 = vsyncpa [#allocation3], 1 }
 0x260   :  { %997 = vsyncpa [#allocation5], 1 }
 0x261   :  { %998 = vsyncpa [#allocation8], 1 }

</bundles_post_ra>
